<compile_context>
chip_gen: v7x
topology: tpu7x:2x2x1
jax: 0.10.0
libtpu: 0.0.40
codegen_flags: <defaults>
</compile_context>

<pallas_src>
import jax
import jax.numpy as jnp
from jax.experimental import pallas as pl
from jax.experimental.pallas import tpu as pltpu

LANE = 128
SUBLANE = 8


def _round_up(x, m):
    return ((x + m - 1) // m) * m


def _pad2(a, rows, cols):
    r, c = a.shape
    return jnp.pad(a, ((0, rows - r), (0, cols - c)))


def encoder_kernel(x_ref, w1_ref, b1_ref, w2_ref, b2_ref, wmv_ref, bmv_ref,
                   out_ref):
    # Layer 1: bf16 matmul, f32 accumulate, f32 bias, LeakyReLU(0.2)
    h = jnp.dot(x_ref[...], w1_ref[...],
                preferred_element_type=jnp.float32) + b1_ref[...]
    h = jnp.maximum(h, 0.2 * h)

    # Layer 2
    h = jnp.dot(h.astype(jnp.bfloat16), w2_ref[...],
                preferred_element_type=jnp.float32) + b2_ref[...]
    h = jnp.maximum(h, 0.2 * h)

    # Fused heads: [mean | log_var] in one lane-dense matmul + unmasked store
    out_ref[...] = (jnp.dot(h.astype(jnp.bfloat16), wmv_ref[...],
                            preferred_element_type=jnp.float32)
                    + bmv_ref[...]).astype(out_ref.dtype)


def encoder_forward(x, params, latent_dim, *, batch_tile=128):
    """x: (B, input_dim) float. params: lane-padded bf16 weights (in, out) and
    f32 biases (1, out), mean/log_var heads pre-fused into wmv/bmv."""
    B, input_dim = x.shape
    in_pad, hid_pad = params["w1"].shape
    fused_pad = params["wmv"].shape[1]

    # Batch tile: full 128 for big batches, 8-row granularity for tiny ones.
    bt = min(batch_tile, max(SUBLANE, _round_up(B, SUBLANE)))
    n_tiles = pl.cdiv(B, bt)
    b_pad = n_tiles * bt

    x_bf16 = x.astype(jnp.bfloat16)
    if b_pad != B or in_pad != input_dim:
        x_bf16 = jnp.pad(x_bf16, ((0, b_pad - B), (0, in_pad - input_dim)))

    # Advisory cost hint for XLA's scheduler.
    flops = 2 * b_pad * (in_pad * hid_pad
                         + hid_pad * hid_pad
                         + hid_pad * fused_pad)
    bytes_accessed = (
        x_bf16.size * 2
        + sum(int(p.size) * p.dtype.itemsize for p in params.values())
        + b_pad * fused_pad * 4)

    resident = lambda arr: pl.BlockSpec(arr.shape, lambda i: (0, 0))

    fused = pl.pallas_call(
        encoder_kernel,
        out_shape=jax.ShapeDtypeStruct((b_pad, fused_pad), jnp.float32),
        grid=(n_tiles,),
        in_specs=[
            pl.BlockSpec((bt, in_pad), lambda i: (i, 0)),
            resident(params["w1"]), resident(params["b1"]),
            resident(params["w2"]), resident(params["b2"]),
            resident(params["wmv"]), resident(params["bmv"]),
        ],
        out_specs=pl.BlockSpec((bt, fused_pad), lambda i: (i, 0)),
        compiler_params=pltpu.CompilerParams(
            dimension_semantics=("parallel",),
            vmem_limit_bytes=64 << 20,
        ),
        cost_estimate=pl.CostEstimate(
            flops=flops, transcendentals=0, bytes_accessed=bytes_accessed),
    )(x_bf16, params["w1"], params["b1"], params["w2"], params["b2"],
      params["wmv"], params["bmv"])

    fused = fused[:B]
    return fused[:, :latent_dim], fused[:, latent_dim:2 * latent_dim]


def init_linear(key, fan_in, fan_out):
    """Deterministic init matching nn.Linear's default U(-1/sqrt(fan_in), ...)."""
    kw, kb = jax.random.split(key)
    bound = 1.0 / jnp.sqrt(fan_in)
    w = jax.random.uniform(kw, (fan_in, fan_out), jnp.float32, -bound, bound)
    b = jax.random.uniform(kb, (1, fan_out), jnp.float32, -bound, bound)
    return w, b


def make_params(key, input_dim, hidden_dim, latent_dim):
    """Build head-fused, lane-padded (multiples of 128) bf16/f32 parameters."""
    k1, k2, km, kv = jax.random.split(key, 4)
    w1, b1 = init_linear(k1, input_dim, hidden_dim)
    w2, b2 = init_linear(k2, hidden_dim, hidden_dim)
    wm, bm = init_linear(km, hidden_dim, latent_dim)
    wv, bv = init_linear(kv, hidden_dim, latent_dim)

    wmv = jnp.concatenate([wm, wv], axis=1)
    bmv = jnp.concatenate([bm, bv], axis=1)

    in_pad = _round_up(input_dim, LANE)
    hid_pad = _round_up(hidden_dim, LANE)
    fused_pad = _round_up(2 * latent_dim, LANE)

    return dict(
        w1=_pad2(w1, in_pad, hid_pad).astype(jnp.bfloat16),
        b1=_pad2(b1, 1, hid_pad),
        w2=_pad2(w2, hid_pad, hid_pad).astype(jnp.bfloat16),
        b2=_pad2(b2, 1, hid_pad),
        wmv=_pad2(wmv, hid_pad, fused_pad).astype(jnp.bfloat16),
        bmv=_pad2(bmv, 1, fused_pad),
    )


def reference_forward(x, params, latent_dim):
    """Plain-JAX reference with the same bf16-in / f32-accumulate numerics.
    Zero padding of features is exact, so padded params give the same result."""
    in_pad = params["w1"].shape[0]
    x = jnp.pad(x, ((0, 0), (0, in_pad - x.shape[1]))).astype(jnp.bfloat16)
    lrelu = lambda t: jnp.maximum(t, 0.2 * t)
    h = lrelu(jnp.dot(x, params["w1"],
                      preferred_element_type=jnp.float32) + params["b1"])
    h = lrelu(jnp.dot(h.astype(jnp.bfloat16), params["w2"],
                      preferred_element_type=jnp.float32) + params["b2"])
    fused = (jnp.dot(h.astype(jnp.bfloat16), params["wmv"],
                     preferred_element_type=jnp.float32) + params["bmv"])
    return fused[:, :latent_dim], fused[:, latent_dim:2 * latent_dim]


if __name__ == "__main__":
    # Small shapes consistent with the module structure (module defaults are
    # input_dim=3072, hidden=600, latent=300). Deliberately non-128-aligned to
    # exercise the lane/batch padding paths.
    batch = 10
    input_dim = 200
    hidden_dim = 96
    latent_dim = 48

    key = jax.random.PRNGKey(0)
    kx, kp = jax.random.split(key)

    x = jax.random.normal(kx, (batch, input_dim), jnp.float32)
    params = make_params(kp, input_dim, hidden_dim, latent_dim)

    mean, log_var = encoder_forward(x, params, latent_dim)
    jax.block_until_ready((mean, log_var))

    # Sanity check against a plain-JAX reference with matching numerics.
    mean_ref, log_var_ref = reference_forward(x, params, latent_dim)
    assert mean.shape == (batch, latent_dim)
    assert log_var.shape == (batch, latent_dim)
    assert jnp.allclose(mean, mean_ref, atol=2e-3, rtol=2e-3)
    assert jnp.allclose(log_var, log_var_ref, atol=2e-3, rtol=2e-3)

    print("KERNEL_OK")
</pallas_src>

<mosaic_0001>
module attributes {stable_mosaic.version = 11 : i64} {
  func.func @encoder_kernel(%arg0: i32, %arg1: memref<16x256xbf16, #tpu.memory_space<vmem>>, %arg2: memref<256x128xbf16, #tpu.memory_space<vmem>>, %arg3: memref<1x128xf32, #tpu.memory_space<vmem>>, %arg4: memref<128x128xbf16, #tpu.memory_space<vmem>>, %arg5: memref<1x128xf32, #tpu.memory_space<vmem>>, %arg6: memref<128x128xbf16, #tpu.memory_space<vmem>>, %arg7: memref<1x128xf32, #tpu.memory_space<vmem>>, %arg8: memref<16x128xf32, #tpu.memory_space<vmem>>) attributes {dimension_semantics = [#tpu.dimension_semantics<parallel>], iteration_bounds = array<i64: 1>, scalar_prefetch = 0 : i64, scratch_operands = 0 : i64, tpu.core_type = #tpu.core_type<tc>, window_params = [{transform_indices = @transform_0, window_bounds = array<i64: 16, 256>}, {pipeline_mode = #tpu.pipeline_mode<synchronous>, transform_indices = @transform_1, window_bounds = array<i64: 256, 128>}, {pipeline_mode = #tpu.pipeline_mode<synchronous>, transform_indices = @transform_2, window_bounds = array<i64: 1, 128>}, {pipeline_mode = #tpu.pipeline_mode<synchronous>, transform_indices = @transform_3, window_bounds = array<i64: 128, 128>}, {pipeline_mode = #tpu.pipeline_mode<synchronous>, transform_indices = @transform_4, window_bounds = array<i64: 1, 128>}, {pipeline_mode = #tpu.pipeline_mode<synchronous>, transform_indices = @transform_5, window_bounds = array<i64: 128, 128>}, {pipeline_mode = #tpu.pipeline_mode<synchronous>, transform_indices = @transform_6, window_bounds = array<i64: 1, 128>}, {transform_indices = @transform_7, window_bounds = array<i64: 16, 128>}]} {
    %c0 = arith.constant 0 : index
    %c0_0 = arith.constant 0 : index
    %0 = vector.load %arg1[%c0, %c0_0] : memref<16x256xbf16, #tpu.memory_space<vmem>>, vector<16x256xbf16>
    %c0_1 = arith.constant 0 : index
    %c0_2 = arith.constant 0 : index
    %1 = vector.load %arg2[%c0_1, %c0_2] : memref<256x128xbf16, #tpu.memory_space<vmem>>, vector<256x128xbf16>
    %cst = arith.constant dense<0.000000e+00> : vector<16x128xf32>
    %2 = tpu.matmul %0, %1, %cst {dimension_numbers = #tpu.dot_dimension_numbers<[1], [0], [0], [1], [0, 0, 1, 1], [], []>} : vector<16x256xbf16>, vector<256x128xbf16>, vector<16x128xf32> -> vector<16x128xf32>
    %c0_3 = arith.constant 0 : index
    %c0_4 = arith.constant 0 : index
    %3 = vector.load %arg3[%c0_3, %c0_4] : memref<1x128xf32, #tpu.memory_space<vmem>>, vector<1x128xf32>
    %4 = vector.broadcast %3 : vector<1x128xf32> to vector<16x128xf32>
    %5 = arith.addf %2, %4 : vector<16x128xf32>
    %cst_5 = arith.constant 2.000000e-01 : f32
    %6 = vector.broadcast %cst_5 : f32 to vector<16x128xf32>
    %7 = arith.mulf %6, %5 : vector<16x128xf32>
    %8 = arith.maximumf %5, %7 : vector<16x128xf32>
    %9 = arith.truncf %8 : vector<16x128xf32> to vector<16x128xbf16>
    %c0_6 = arith.constant 0 : index
    %c0_7 = arith.constant 0 : index
    %10 = vector.load %arg4[%c0_6, %c0_7] : memref<128x128xbf16, #tpu.memory_space<vmem>>, vector<128x128xbf16>
    %cst_8 = arith.constant dense<0.000000e+00> : vector<16x128xf32>
    %11 = tpu.matmul %9, %10, %cst_8 {dimension_numbers = #tpu.dot_dimension_numbers<[1], [0], [0], [1], [0, 0, 1, 1], [], []>} : vector<16x128xbf16>, vector<128x128xbf16>, vector<16x128xf32> -> vector<16x128xf32>
    %c0_9 = arith.constant 0 : index
    %c0_10 = arith.constant 0 : index
    %12 = vector.load %arg5[%c0_9, %c0_10] : memref<1x128xf32, #tpu.memory_space<vmem>>, vector<1x128xf32>
    %13 = vector.broadcast %12 : vector<1x128xf32> to vector<16x128xf32>
    %14 = arith.addf %11, %13 : vector<16x128xf32>
    %cst_11 = arith.constant 2.000000e-01 : f32
    %15 = vector.broadcast %cst_11 : f32 to vector<16x128xf32>
    %16 = arith.mulf %15, %14 : vector<16x128xf32>
    %17 = arith.maximumf %14, %16 : vector<16x128xf32>
    %18 = arith.truncf %17 : vector<16x128xf32> to vector<16x128xbf16>
    %c0_12 = arith.constant 0 : index
    %c0_13 = arith.constant 0 : index
    %19 = vector.load %arg6[%c0_12, %c0_13] : memref<128x128xbf16, #tpu.memory_space<vmem>>, vector<128x128xbf16>
    %cst_14 = arith.constant dense<0.000000e+00> : vector<16x128xf32>
    %20 = tpu.matmul %18, %19, %cst_14 {dimension_numbers = #tpu.dot_dimension_numbers<[1], [0], [0], [1], [0, 0, 1, 1], [], []>} : vector<16x128xbf16>, vector<128x128xbf16>, vector<16x128xf32> -> vector<16x128xf32>
    %c0_15 = arith.constant 0 : index
    %c0_16 = arith.constant 0 : index
    %21 = vector.load %arg7[%c0_15, %c0_16] : memref<1x128xf32, #tpu.memory_space<vmem>>, vector<1x128xf32>
    %22 = vector.broadcast %21 : vector<1x128xf32> to vector<16x128xf32>
    %23 = arith.addf %20, %22 : vector<16x128xf32>
    %c0_17 = arith.constant 0 : index
    %c0_18 = arith.constant 0 : index
    %24 = vector.load %arg8[%c0_17, %c0_18] : memref<16x128xf32, #tpu.memory_space<vmem>>, vector<16x128xf32>
    tpu.vector_store %arg8[%c0_17, %c0_18], %23 {strides = array<i32>} : memref<16x128xf32, #tpu.memory_space<vmem>>, vector<16x128xf32>,
    return
  }
  func.func @transform_0(%arg0: i32) -> (i32, i32) {
    %c0_i32 = arith.constant 0 : i32
    %c0_i32_0 = arith.constant 0 : i32
    return %arg0, %c0_i32 : i32, i32
  }
  func.func @transform_1(%arg0: i32) -> (i32, i32) {
    %c0_i32 = arith.constant 0 : i32
    %c0_i32_0 = arith.constant 0 : i32
    %c0_i32_1 = arith.constant 0 : i32
    return %c0_i32, %c0_i32_0 : i32, i32
  }
  func.func @transform_2(%arg0: i32) -> (i32, i32) {
    %c0_i32 = arith.constant 0 : i32
    %c0_i32_0 = arith.constant 0 : i32
    %c0_i32_1 = arith.constant 0 : i32
    return %c0_i32, %c0_i32_0 : i32, i32
  }
  func.func @transform_3(%arg0: i32) -> (i32, i32) {
    %c0_i32 = arith.constant 0 : i32
    %c0_i32_0 = arith.constant 0 : i32
    %c0_i32_1 = arith.constant 0 : i32
    return %c0_i32, %c0_i32_0 : i32, i32
  }
  func.func @transform_4(%arg0: i32) -> (i32, i32) {
    %c0_i32 = arith.constant 0 : i32
    %c0_i32_0 = arith.constant 0 : i32
    %c0_i32_1 = arith.constant 0 : i32
    return %c0_i32, %c0_i32_0 : i32, i32
  }
  func.func @transform_5(%arg0: i32) -> (i32, i32) {
    %c0_i32 = arith.constant 0 : i32
    %c0_i32_0 = arith.constant 0 : i32
    %c0_i32_1 = arith.constant 0 : i32
    return %c0_i32, %c0_i32_0 : i32, i32
  }
  func.func @transform_6(%arg0: i32) -> (i32, i32) {
    %c0_i32 = arith.constant 0 : i32
    %c0_i32_0 = arith.constant 0 : i32
    %c0_i32_1 = arith.constant 0 : i32
    return %c0_i32, %c0_i32_0 : i32, i32
  }
  func.func @transform_7(%arg0: i32) -> (i32, i32) {
    %c0_i32 = arith.constant 0 : i32
    %c0_i32_0 = arith.constant 0 : i32
    return %arg0, %c0_i32 : i32, i32
  }
}

</mosaic_0001>

<bundles_post_ra>
// kernel: tpu_custom_call.1
= control target key start
LH: loop header
LB: loop body
LE: loop exit
PB: predicated region body
PF: predicated region fallthrough
CT: control target
= control target key end

     0   :  { %12 = vsyncpa [#allocation3], 0  ;;  %s1096_s0 = inlined_call_operand.hbm [shape: bf16[16,256], index: 0, kind: input, shape index: {}]   ;;  %s1097_s1 = inlined_call_operand.hbm [shape: bf16[256,128], index: 1, kind: input, shape index: {}]   ;;  %s1098_s2 = inlined_call_operand.hbm [shape: f32[1,128], index: 2, kind: input, shape index: {}]   ;;  %s1099_s3 = inlined_call_operand.hbm [shape: bf16[128,128], index: 3, kind: input, shape index: {}]   ;;  %s1100_s4 = inlined_call_operand.hbm [shape: f32[1,128], index: 4, kind: input, shape index: {}]   ;;  %s1101_s5 = inlined_call_operand.hbm [shape: bf16[128,128], index: 5, kind: input, shape index: {}]   ;;  %s1102_s6 = inlined_call_operand.hbm [shape: f32[1,128], index: 6, kind: input, shape index: {}]   ;;  %s1103_s7 = inlined_call_operand.hbm [shape: f32[16,128], index: 7, kind: output, shape index: {}]  }
   0x1   :  { %13 = vsyncpa [#allocation6], 0 }
   0x2   :  { %14 = vsyncpa [#allocation9], 0 }
   0x3   :  { %15 = vsyncpa [#allocation12], 0 }
   0x4   :  { %16 = vsyncpa [#allocation4], 0  ;;  %s913_s24 = smov [#allocation5]   ;;  %s727_s28 = scalar_lea.hbm %s1097_s1, 2048 }
   0x5   :  { %s34_s25 = sshll.u32 %s913_s24, 4  ;;  %p728_p0 = scmp.ne.s32.totalorder %s1097_s1, %s727_s28  ;;  %s35_s25 = int_to_ptr.vmem [resolvable:$true] %s34_s25 }
   0x6   :  { %p731_p1 = scmp.lt.u32.totalorder %s727_s28, %s1097_s1 }
   0x8   :  { %p733_p2 = pnand %p731_p1, %p728_p0 }
   0xa   :  { %736 = shalt.err (!%p733_p2)
}
   0xb   :  { %s737_s10 = scalar_lea.vmem %s35_s25, 2048  ;;  %p742_p4 = scmp.lt.s32.totalorder %s35_s25, %s35_s25 }
   0xc   :  { %p738_p3 = scmp.ne.s32.totalorder %s35_s25, %s737_s10  ;;  %p743_p5 = scmp.lt.s32.totalorder %s737_s10, %s737_s10 }
   0xe   :  { %p744_p6 = por %p743_p5, %p742_p4 }
  0x10   :  { %p745_p7 = pnand %p744_p6, %p738_p3 }
  0x12   :  { %748 = shalt.err (!%p745_p7)
}
  0x13   :  { %s914_s11 = smov 64   ;;  %s915_s12 = smov 4  }
  0x14   :  { %40 = dma.hbm_to_vmem [thread:$0]  %s1097_s1, 2048, %s35_s25, [#allocation6], %s914_s11, %s914_s11, %s915_s12  }
  0x15   :  { %s916_s15 = smov [#allocation8]   ;;  %s917_s17 = smov [#allocation11]  }
  0x16   :  { %s56_s16 = sshll.u32 %s916_s15, 4  ;;  %s78_s18 = sshll.u32 %s917_s17, 4  ;;  %s57_s16 = int_to_ptr.vmem [resolvable:$true] %s56_s16  ;;  %s79_s18 = int_to_ptr.vmem [resolvable:$true] %s78_s18 }
  0x17   :  { %s749_s21 = scalar_lea.hbm %s1099_s3, 1024 }
  0x18   :  { %p750_p8 = scmp.ne.s32.totalorder %s1099_s3, %s749_s21  ;;  %p753_p9 = scmp.lt.u32.totalorder %s749_s21, %s1099_s3 }
  0x1a   :  { %p755_p10 = pnand %p753_p9, %p750_p8 }
  0x1c   :  { %758 = shalt.err (!%p755_p10)
}
  0x1d   :  { %s759_s1 = scalar_lea.vmem %s57_s16, 1024  ;;  %p764_p12 = scmp.lt.s32.totalorder %s57_s16, %s57_s16 }
  0x1e   :  { %p760_p11 = scmp.ne.s32.totalorder %s57_s16, %s759_s1  ;;  %p765_p13 = scmp.lt.s32.totalorder %s759_s1, %s759_s1 }
  0x20   :  { %p766_p0 = por %p765_p13, %p764_p12 }
  0x22   :  { %p767_p1 = pnand %p766_p0, %p760_p11 }
  0x24   :  { %770 = shalt.err (!%p767_p1)
}
  0x25   :  { %62 = dma.hbm_to_vmem [thread:$0]  %s1099_s3, 1024, %s57_s16, [#allocation9], %s914_s11, %s914_s11, %s915_s12  }
  0x26   :  { %s771_s30 = scalar_lea.hbm %s1101_s5, 1024 }
  0x27   :  { %p772_p2 = scmp.ne.s32.totalorder %s1101_s5, %s771_s30  ;;  %p775_p3 = scmp.lt.u32.totalorder %s771_s30, %s1101_s5 }
  0x29   :  { %p777_p4 = pnand %p775_p3, %p772_p2 }
  0x2b   :  { %780 = shalt.err (!%p777_p4)
}
  0x2c   :  { %s781_s14 = scalar_lea.vmem %s79_s18, 1024  ;;  %p786_p6 = scmp.lt.s32.totalorder %s79_s18, %s79_s18 }
  0x2d   :  { %p782_p5 = scmp.ne.s32.totalorder %s79_s18, %s781_s14  ;;  %p787_p7 = scmp.lt.s32.totalorder %s781_s14, %s781_s14 }
  0x2f   :  { %p788_p8 = por %p787_p7, %p786_p6 }
  0x31   :  { %p789_p9 = pnand %p788_p8, %p782_p5 }
  0x33   :  { %792 = shalt.err (!%p789_p9)
}
  0x34   :  { %84 = dma.hbm_to_vmem [thread:$0]  %s1101_s5, 1024, %s79_s18, [#allocation12], %s914_s11, %s914_s11, %s915_s12  }
  0x35   :  { %s918_s16 = smov [#allocation2]   ;;  %s793_s21 = scalar_lea.hbm %s1096_s0, 256 }
  0x36   :  { %s22_s17 = sshll.u32 %s918_s16, 4  ;;  %p794_p10 = scmp.ne.s32.totalorder %s1096_s0, %s793_s21  ;;  %s23_s17 = int_to_ptr.vmem [resolvable:$true] %s22_s17 }
  0x37   :  { %p797_p11 = scmp.lt.u32.totalorder %s793_s21, %s1096_s0 }
  0x39   :  { %p799_p12 = pnand %p797_p11, %p794_p10 }
  0x3b   :  { %802 = shalt.err (!%p799_p12)
}
  0x3c   :  { %s803_s1 = scalar_lea.vmem %s23_s17, 256  ;;  %p808_p0 = scmp.lt.s32.totalorder %s23_s17, %s23_s17 }
  0x3d   :  { %p804_p13 = scmp.ne.s32.totalorder %s23_s17, %s803_s1  ;;  %p809_p1 = scmp.lt.s32.totalorder %s803_s1, %s803_s1 }
  0x3f   :  { %p810_p2 = por %p809_p1, %p808_p0 }
  0x41   :  { %p811_p3 = pnand %p810_p2, %p804_p13 }
  0x43   :  { %814 = shalt.err (!%p811_p3)
}
  0x44   :  { %s919_s5 = smov 128   ;;  %s920_s11 = smov 8  }
  0x45   :  { %28 = dma.hbm_to_vmem [thread:$0]  %s1096_s0, 256, %s23_s17, [#allocation3], %s919_s5, %s919_s5, %s920_s11  }
  0x46   :  { %s921_s25 = smov [#allocation7]   ;;  %s922_s28 = smov [#allocation10]  }
  0x47   :  { %s47_s27 = sshll.u32 %s921_s25, 4  ;;  %s69_s29 = sshll.u32 %s922_s28, 4  ;;  %s48_s27 = int_to_ptr.vmem [resolvable:$true] %s47_s27  ;;  %s70_s29 = int_to_ptr.vmem [resolvable:$true] %s69_s29 }
  0x48   :  { %s815_s9 = scalar_lea.hbm %s1098_s2, 16 }
  0x49   :  { %p816_p4 = scmp.ne.s32.totalorder %s1098_s2, %s815_s9  ;;  %p819_p5 = scmp.lt.u32.totalorder %s815_s9, %s1098_s2 }
  0x4b   :  { %p821_p6 = pnand %p819_p5, %p816_p4 }
  0x4d   :  { %824 = shalt.err (!%p821_p6)
}
  0x4e   :  { %s825_s0 = scalar_lea.vmem %s48_s27, 16  ;;  %s829_s15 = scalar_lea.vmem %s48_s27, 32 }
  0x4f   :  { %p826_p7 = scmp.ne.s32.totalorder %s48_s27, %s825_s0  ;;  %p830_p8 = scmp.lt.s32.totalorder %s48_s27, %s48_s27 }
  0x50   :  { %p831_p9 = scmp.lt.s32.totalorder %s829_s15, %s825_s0 }
  0x52   :  { %p832_p10 = por %p831_p9, %p830_p8 }
  0x54   :  { %p833_p11 = pnand %p832_p10, %p826_p7 }
  0x56   :  { %836 = shalt.err (!%p833_p11)
}
  0x57   :  { %50 = dma.hbm_to_vmem [thread:$0]  %s1098_s2, 16, %s48_s27, [#allocation6]  }
  0x58   :  { %s837_s21 = scalar_lea.hbm %s1100_s4, 16 }
  0x59   :  { %p838_p12 = scmp.ne.s32.totalorder %s1100_s4, %s837_s21  ;;  %p841_p13 = scmp.lt.u32.totalorder %s837_s21, %s1100_s4 }
  0x5b   :  { %p843_p0 = pnand %p841_p13, %p838_p12 }
  0x5d   :  { %846 = shalt.err (!%p843_p0)
}
  0x5e   :  { %s847_s1 = scalar_lea.vmem %s70_s29, 16  ;;  %s851_s12 = scalar_lea.vmem %s70_s29, 32 }
  0x5f   :  { %p848_p1 = scmp.ne.s32.totalorder %s70_s29, %s847_s1  ;;  %p852_p2 = scmp.lt.s32.totalorder %s70_s29, %s70_s29 }
  0x60   :  { %p853_p3 = scmp.lt.s32.totalorder %s851_s12, %s847_s1 }
  0x62   :  { %p854_p4 = por %p853_p3, %p852_p2 }
  0x64   :  { %p855_p5 = pnand %p854_p4, %p848_p1 }
  0x66   :  { %858 = shalt.err (!%p855_p5)
}
  0x67   :  { %72 = dma.hbm_to_vmem [thread:$0]  %s1100_s4, 16, %s70_s29, [#allocation9]  }
  0x68   :  { %s923_s25 = smov [#allocation13]   ;;  %s859_s8 = scalar_lea.hbm %s1102_s6, 16 }
  0x69   :  { %s91_s27 = sshll.u32 %s923_s25, 4  ;;  %p860_p6 = scmp.ne.s32.totalorder %s1102_s6, %s859_s8  ;;  %s92_s27 = int_to_ptr.vmem [resolvable:$true] %s91_s27 }
  0x6a   :  { %p863_p7 = scmp.lt.u32.totalorder %s859_s8, %s1102_s6 }
  0x6c   :  { %p865_p8 = pnand %p863_p7, %p860_p6 }
  0x6e   :  { %868 = shalt.err (!%p865_p8)
}
  0x6f   :  { %s869_s3 = scalar_lea.vmem %s92_s27, 16  ;;  %s873_s4 = scalar_lea.vmem %s92_s27, 32 }
  0x70   :  { %p870_p9 = scmp.ne.s32.totalorder %s92_s27, %s869_s3  ;;  %p874_p10 = scmp.lt.s32.totalorder %s92_s27, %s92_s27 }
  0x71   :  { %p875_p11 = scmp.lt.s32.totalorder %s873_s4, %s869_s3 }
  0x73   :  { %p876_p12 = por %p875_p11, %p874_p10 }
  0x75   :  { %p877_p13 = pnand %p876_p12, %p870_p9 }
  0x77   :  { %880 = shalt.err (!%p877_p13)
}
  0x78   :  { %94 = dma.hbm_to_vmem [thread:$0]  %s1102_s6, 16, %s92_s27, [#allocation12]  }
  0x79   :  { %903 = dma.done.wait [#allocation3], 256  }
  0x7a   :  { %904 = vsyncadd [#allocation3], 4294967040 }
  0x7b   :  { %905 = dma.done.wait [#allocation6], 2064  }
  0x7c   :  { %906 = vsyncadd [#allocation6], 4294965232 }
  0x7d   :  { %907 = dma.done.wait [#allocation9], 1040  }
  0x7e   :  { %908 = vsyncadd [#allocation9], 4294966256 }
  0x7f   :  { %909 = dma.done.wait [#allocation12], 1040  }
  0x80   :  { %910 = vsyncadd [#allocation12], 4294966256  ;;  %v924_v0 = vmov 0.0   ;;  %v692_v1 = vld [vmem:[#allocation5 + $0x40] sm:$0xff]   ;;  %v694_v3 = vld [vmem:[#allocation5 + $0x48] sm:$0xff]   ;;  %vm925_vm0 = vmmov 0  }
  0x81   :  { %638 = vmatprep.subr.bf16.mxu1 %v924_v0  ;;  %v693_v2 = vld [vmem:[#allocation5] sm:$0xff]   ;;  %598 = vmatprep.subr.bf16.mxu0 %v692_v1  ;;  %v695_v4 = vld [vmem:[#allocation5 + $0x8] sm:$0xff]   ;;  %v696_v5 = vld [vmem:[#allocation5 + $0x50] sm:$0xff]   ;;  %s926_s6 = smov [#allocation14]  }
  0x82   :  { %599 = vmatpush3.bf16.msra.mxu0 %v693_v2  ;;  %v697_v6 = vld [vmem:[#allocation5 + $0x10] sm:$0xff]   ;;  %v698_v7 = vld [vmem:[#allocation5 + $0x58] sm:$0xff]   ;;  %v700_v9 = vld [vmem:[#allocation5 + $0x60] sm:$0xff]   ;;  %654 = vmatprep.mubr.msk.bf16.mxu1 %vm925_vm0, %v924_v0  ;;  %s546_s15 = sshll.u32 %s926_s6, 4  ;;  %s547_s15 = int_to_ptr.vmem [resolvable:$true] %s546_s15 }
  0x83   :  { %600 = vmatprep.subr.bf16.mxu0 %v694_v3  ;;  %v699_v8 = vld [vmem:[#allocation5 + $0x18] sm:$0xff]   ;;  %v701_v10 = vld [vmem:[#allocation5 + $0x20] sm:$0xff]   ;;  %v702_v11 = vld [vmem:[#allocation5 + $0x68] sm:$0xff]   ;;  %s881_s16 = scalar_lea.vmem %s547_s15, 256  ;;  %p886_p1 = scmp.lt.s32.totalorder %s547_s15, %s547_s15 }
  0x84   :  { %v703_v12 = vld [vmem:[#allocation5 + $0x28] sm:$0xff]   ;;  %v710_v13 = vld [vmem:[#allocation2 + $0x4] ss:$8 sps:$4 sm:$0xff]   ;;  %v708_v22 = vld [vmem:[#allocation2] ss:$8 sps:$4 sm:$0xff]   ;;  %p882_p0 = scmp.ne.s32.totalorder %s547_s15, %s881_s16  ;;  %p887_p2 = scmp.lt.s32.totalorder %s881_s16, %s881_s16 }
  0x85   :  { %v711_v14 = vld [vmem:[#allocation8] sm:$0xff]   ;;  %v704_v15 = vld [vmem:[#allocation5 + $0x70] sm:$0xff]   ;;  %296 = vmatprep.mubr.bf16.mxu0 %v710_v13  ;;  %v706_v18 = vld [vmem:[#allocation5 + $0x78] sm:$0xff]  }
  0x86   :  { %601 = vmatpush3.bf16.msra.mxu0 %v695_v4  ;;  %639 = vmatpush3.bf16.msra.mxu1 %v711_v14  ;;  %v712_v16 = vld [vmem:[#allocation8 + $0x8] sm:$0xff]   ;;  %v713_v19 = vld [vmem:[#allocation8 + $0x10] sm:$0xff]   ;;  %v714_v21 = vld [vmem:[#allocation8 + $0x18] sm:$0xff]   ;;  %p888_p3 = por %p887_p2, %p886_p1 }
  0x87   :  { %602 = vmatprep.subr.bf16.mxu0 %v696_v5  ;;  %v705_v17 = vld [vmem:[#allocation5 + $0x30] sm:$0xff]   ;;  %640 = vmatprep.subr.bf16.mxu1 %v924_v0  ;;  %v707_v20 = vld [vmem:[#allocation5 + $0x38] sm:$0xff]   ;;  %v715_v23 = vld [vmem:[#allocation8 + $0x20] sm:$0xff]  }
  0x88   :  { %v716_v24 = vld [vmem:[#allocation8 + $0x28] sm:$0xff]   ;;  %v717_v25 = vld [vmem:[#allocation8 + $0x30] sm:$0xff]   ;;  %v718_v26 = vld [vmem:[#allocation8 + $0x38] sm:$0xff]   ;;  %p889_p4 = pnand %p888_p3, %p882_p0 }
  0x89   :  { %v719_v27 = vld [vmem:[#allocation11] sm:$0xff]   ;;  %v720_v28 = vld [vmem:[#allocation11 + $0x8] sm:$0xff]   ;;  %v721_v29 = vld [vmem:[#allocation11 + $0x10] sm:$0xff]  }
  0x8a   :  { %603 = vmatpush3.bf16.msra.mxu0 %v697_v6  ;;  %641 = vmatpush3.bf16.msra.mxu1 %v712_v16  ;;  %v722_v30 = vld [vmem:[#allocation11 + $0x18] sm:$0xff]   ;;  %v723_v31 = vld [vmem:[#allocation11 + $0x20] sm:$0xff]   ;;  %v724_v46 = vld [vmem:[#allocation11 + $0x28] sm:$0xff]  }
  0x8b   :  { %604 = vmatprep.subr.bf16.mxu0 %v698_v7  ;;  %642 = vmatprep.subr.bf16.mxu1 %v924_v0  ;;  %v561_v33 = vld [vmem:[#allocation7] ss:$0 sm:$0xff]  ;;  %v725_v47 = vld [vmem:[#allocation11 + $0x30] sm:$0xff]   ;;  %v580_v49 = vld [vmem:[#allocation10] ss:$0 sm:$0xff] }
  0x8c   :  { %v726_v48 = vld [vmem:[#allocation11 + $0x38] sm:$0xff]   ;;  %v589_v61 = vld [vmem:[#allocation13] ss:$0 sm:$0xff] }
  0x8e   :  { %605 = vmatpush3.bf16.msra.mxu0 %v699_v8  ;;  %643 = vmatpush3.bf16.msra.mxu1 %v713_v19 }
  0x8f   :  { %606 = vmatprep.subr.bf16.mxu0 %v700_v9  ;;  %644 = vmatprep.subr.bf16.mxu1 %v924_v0 }
  0x92   :  { %607 = vmatpush3.bf16.msra.mxu0 %v701_v10  ;;  %645 = vmatpush3.bf16.msra.mxu1 %v714_v21 }
  0x93   :  { %608 = vmatprep.subr.bf16.mxu0 %v702_v11  ;;  %646 = vmatprep.subr.bf16.mxu1 %v924_v0 }
  0x96   :  { %609 = vmatpush3.bf16.msra.mxu0 %v703_v12  ;;  %647 = vmatpush3.bf16.msra.mxu1 %v715_v23 }
  0x97   :  { %610 = vmatprep.subr.bf16.mxu0 %v704_v15  ;;  %648 = vmatprep.subr.bf16.mxu1 %v924_v0 }
  0x9a   :  { %611 = vmatpush3.bf16.msra.mxu0 %v705_v17  ;;  %649 = vmatpush3.bf16.msra.mxu1 %v716_v24 }
  0x9b   :  { %612 = vmatprep.subr.bf16.mxu0 %v706_v18  ;;  %650 = vmatprep.subr.bf16.mxu1 %v924_v0 }
  0x9e   :  { %613 = vmatpush3.bf16.msra.mxu0 %v707_v20  ;;  %651 = vmatpush3.bf16.msra.mxu1 %v717_v25 }
  0x9f   :  { %658 = vmatprep.subr.bf16.mxu0 %v924_v0  ;;  %652 = vmatprep.subr.bf16.mxu1 %v924_v0 }
  0xa1   :  { %297 = vmatmul.mubr.bf16.vlgmr.msra.gmra.mrb[0].mxu0 %v708_v22 }
  0xa2   :  { %653 = vmatpush3.bf16.msra.mxu1 %v718_v26  ;;  %674 = vmatprep.mubr.msk.bf16.mxu0 %vm925_vm0, %v924_v0 }
  0xa3   :  { %659 = vmatpush3.bf16.msra.mxu0 %v719_v27 }
  0xa4   :  { %660 = vmatprep.subr.bf16.mxu0 %v924_v0 }
  0xa7   :  { %661 = vmatpush3.bf16.msra.mxu0 %v720_v28 }
  0xa8   :  { %662 = vmatprep.subr.bf16.mxu0 %v924_v0 }
  0xab   :  { %663 = vmatpush3.bf16.msra.mxu0 %v721_v29 }
  0xac   :  { %664 = vmatprep.subr.bf16.mxu0 %v924_v0 }
  0xaf   :  { %665 = vmatpush3.bf16.msra.mxu0 %v722_v30 }
  0xb0   :  { %666 = vmatprep.subr.bf16.mxu0 %v924_v0 }
  0xb3   :  { %667 = vmatpush3.bf16.msra.mxu0 %v723_v31 }
  0xb4   :  { %668 = vmatprep.subr.bf16.mxu0 %v924_v0 }
  0xb7   :  { %669 = vmatpush3.bf16.msra.mxu0 %v724_v46 }
  0xb8   :  { %670 = vmatprep.subr.bf16.mxu0 %v924_v0 }
  0xbb   :  { %671 = vmatpush3.bf16.msra.mxu0 %v725_v47 }
  0xbc   :  { %672 = vmatprep.subr.bf16.mxu0 %v924_v0 }
  0xbf   :  { %673 = vmatpush3.bf16.msra.mxu0 %v726_v48 }
 0x174   :  { %v614_v32 = vpop.f32.mrb[0].mxu0 }
 0x175   :  { %v615_v34 = vpop.f32.mrb[1].mxu0 }
 0x176   :  { %v616_v35 = vadd.f32 %v615_v34, %v614_v32  ;;  %v617_v36 = vpop.f32.mrb[2].mxu0 }
 0x177   :  { %v618_v37 = vpop.f32.mrb[3].mxu0 }
 0x178   :  { %v299_v38 = vadd.f32 %v616_v35, %v561_v33  ;;  %v619_v39 = vadd.f32 %v618_v37, %v617_v36 }
 0x17a   :  { %v305_v40 = vmul.f32 0.2, %v299_v38  ;;  %v302_v41 = vadd.f32 %v619_v39, %v561_v33 }
 0x17c   :  { %v306_v42 = vmul.f32 0.2, %v302_v41  ;;  %v307_v43 = vmax.f32 %v299_v38, %v305_v40 }
 0x17e   :  { %v308_v44 = vmax.f32 %v302_v41, %v306_v42 }
 0x180   :  { %v309_v45 = vpack.c.bf16 %v308_v44, %v307_v43 }
 0x182   :  { %655 = vmatmul.mubr.bf16.vlgmr.msra.gmra.mrb[0].mxu1 %v309_v45 }
 0x255   :  { %v415_v50 = vpop.f32.mrb[0].mxu1 }
 0x256   :  { %v416_v51 = vadd.f32 %v580_v49, %v415_v50  ;;  %v656_v52 = vpop.f32.mrb[1].mxu1 }
 0x257   :  { %v418_v53 = vpop.f32.mrb[2].mxu1 }
 0x258   :  { %v422_v54 = vmul.f32 0.2, %v416_v51  ;;  %v419_v55 = vadd.f32 %v580_v49, %v418_v53  ;;  %v657_v56 = vpop.f32.mrb[3].mxu1 }
 0x25a   :  { %v423_v57 = vmul.f32 0.2, %v419_v55  ;;  %v424_v58 = vmax.f32 %v416_v51, %v422_v54 }
 0x25c   :  { %v425_v59 = vmax.f32 %v419_v55, %v423_v57 }
 0x25e   :  { %v426_v60 = vpack.c.bf16 %v425_v59, %v424_v58 }
 0x260   :  { %675 = vmatmul.mubr.bf16.vlgmr.msra.gmra.mrb[4].mxu0 %v426_v60 }
 0x333   :  { %v532_v62 = vpop.f32.mrb[4].mxu0 }
 0x334   :  { %v533_v63 = vadd.f32 %v589_v61, %v532_v62  ;;  %v676_v0 = vpop.f32.mrb[5].mxu0 }
 0x335   :  { %v535_v1 = vpop.f32.mrb[6].mxu0 }
 0x336   :  { %539 = vst [vmem:[#allocation14] sm:$0xff] %v533_v63  ;;  %v536_v2 = vadd.f32 %v589_v61, %v535_v1  ;;  %v677_v3 = vpop.f32.mrb[7].mxu0 }
 0x338   :  { %540 = vst [vmem:[#allocation14 + $0x8] sm:$0xff] %v536_v2 }
 0x339   :  { %892 = shalt.err (!%p889_p4)
}
 0x33a   :  { %s893_s20 = scalar_lea.hbm %s1103_s7, 256 }
 0x33b   :  { %p894_p5 = scmp.ne.s32.totalorder %s1103_s7, %s893_s20  ;;  %p897_p6 = scmp.lt.u32.totalorder %s893_s20, %s1103_s7 }
 0x33d   :  { %p899_p7 = pnand %p897_p6, %p894_p5 }
 0x33f   :  { %902 = shalt.err (!%p899_p7)
}
 0x340   :  { %552 = dma.vmem_to_hbm [thread:$0]  %s547_s15, 256, %s1103_s7, [#allocation4], %s919_s5, %s919_s5, %s920_s11  }
 0x341   :  { %911 = dma.done.wait [#allocation4], 256  }
 0x342   :  { %912 = vsyncadd [#allocation4], 4294967040 }
 0x343   :  { %556 = vsyncpa [#allocation3], 1 }
 0x344   :  { %557 = vsyncpa [#allocation6], 1 }
 0x345   :  { %558 = vsyncpa [#allocation9], 1 }
 0x346   :  { %559 = vsyncpa [#allocation12], 1 }
 0x347   :  { %560 = vsyncpa [#allocation4], 1 }

</bundles_post_ra>
